<compile_context>
chip_gen: v7x
topology: tpu7x:2x2x1
jax: 0.10.0
libtpu: 0.0.40
codegen_flags: <defaults>
</compile_context>

<pallas_src>
import functools

import jax
import jax.numpy as jnp
from jax.experimental import pallas as pl
from jax.experimental.pallas import tpu as pltpu

NUM_RELATIONS = 6
NUM_BASES = 30
LANE = 128       # lane width: hidden dim padded to a multiple of this
SUBLANE = 8      # sublane alignment for the node axis
GATE_PAD = 128   # gate-logit columns padded to one lane-dense block


def _round_up(x, m):
    return ((x + m - 1) // m) * m


def _vmem_capacity_bytes():
    try:
        info = pltpu.get_tpu_info()
        v = int(getattr(info, "vmem_capacity_bytes", 0))
        if v > 0:
            return v
    except Exception:
        pass
    return 128 * 1024 * 1024


def _choose_tiling(n):
    """Return (n_pad, (tm, tn, tk), vmem_limit_bytes)."""
    vmem = _vmem_capacity_bytes()
    vmem_limit = int(min(vmem * 3 // 4, 100 * 1024 * 1024))
    n8 = _round_up(n, SUBLANE)
    if n8 <= 512:
        # small graph: single tile on every axis (grid = (1,) / (1, 1)).
        return n8, (n8, n8, NUM_RELATIONS * n8), vmem_limit
    # large graph: long-K contraction is tiled; dst/src tiles are generation
    # aware (v7x has 64 MiB physical VMEM per TC vs 128 MiB on v5e/v6e).
    small_vmem = vmem < 96 * 1024 * 1024
    t = 128 if small_vmem else 256
    n_pad = _round_up(n, 512)          # 512 | n_pad so tk=512 divides R*n_pad
    return n_pad, (t, t, 512), vmem_limit


# --------------------------------------------------------------------------
# Pass 1: gated per-relation messages (one wide MXU matmul per source tile)
# --------------------------------------------------------------------------
def _message_kernel(num_rel, h_pad, x_ref, wmsg_ref, bgate_ref, msg_ref):
    """x_ref    [tm, H_pad]                  bf16 source-node tile
       wmsg_ref [H_pad, R*H_pad + GATE_PAD]  bf16 fused relation + gate weights
       bgate_ref[1, GATE_PAD]                f32  gate bias (first R cols valid)
       msg_ref  [R, tm, H_pad]               bf16 gated messages
    """
    y = jnp.dot(x_ref[...], wmsg_ref[...], preferred_element_type=jnp.float32)
    gate_off = num_rel * h_pad
    # TODO(synk): RGCNConvWithGate source not provided; gate assumed to be a
    # scalar sigmoid per source node per relation (x . w_gate[r] + b_gate[r]),
    # applied to messages before mean aggregation (PyG RGCNConv default).
    gates = jax.nn.sigmoid(y[:, gate_off:] + bgate_ref[...])      # [tm, GATE_PAD]
    for r in range(num_rel):
        msg_ref[r] = (gates[:, r:r + 1]
                      * y[:, r * h_pad:(r + 1) * h_pad]).astype(msg_ref.dtype)


def _compute_messages(x_bf16, w_msg, b_gate_row, *, tm, vmem_limit):
    n_pad, h_pad = x_bf16.shape
    num_rel = NUM_RELATIONS
    wcols = w_msg.shape[1]
    grid = n_pad // tm
    flops = 2 * n_pad * h_pad * wcols + 2 * num_rel * n_pad * h_pad
    bytes_accessed = (2 * (x_bf16.size + w_msg.size + num_rel * n_pad * h_pad)
                      + 4 * b_gate_row.size)
    kernel = functools.partial(_message_kernel, num_rel, h_pad)
    return pl.pallas_call(
        kernel,
        out_shape=jax.ShapeDtypeStruct((num_rel, n_pad, h_pad), jnp.bfloat16),
        grid_spec=pltpu.PrefetchScalarGridSpec(
            num_scalar_prefetch=0,
            grid=(grid,),
            in_specs=[
                pl.BlockSpec((tm, h_pad), lambda i: (i, 0)),        # x src tile
                pl.BlockSpec((h_pad, wcols), lambda i: (0, 0)),     # W_msg
                pl.BlockSpec((1, GATE_PAD), lambda i: (0, 0)),      # gate bias
            ],
            out_specs=pl.BlockSpec((num_rel, tm, h_pad), lambda i: (0, i, 0)),
        ),
        compiler_params=pltpu.CompilerParams(
            dimension_semantics=("parallel",),
            vmem_limit_bytes=vmem_limit),
        cost_estimate=pl.CostEstimate(
            flops=int(flops), transcendentals=int(n_pad * GATE_PAD),
            bytes_accessed=int(bytes_accessed)),
    )(x_bf16, w_msg, b_gate_row)


# --------------------------------------------------------------------------
# Pass 2: aggregation  out = x@W_root + bias + adj_wide @ messages
# --------------------------------------------------------------------------
def _aggregate_kernel(apply_relu, x_ref, wroot_ref, bias_ref, adj_ref, msg_ref,
                      out_ref, acc_ref):
    """x_ref    [tn, H_pad]    bf16 destination-node tile (root transform)
       wroot_ref[H_pad, H_pad] bf16
       bias_ref [1, H_pad]     f32
       adj_ref  [tn, tk]       bf16 slab of wide adjacency (K = R*N_pad)
       msg_ref  [tk, H_pad]    bf16 gated messages
       out_ref  [tn, H_pad]    f32
       acc_ref  [tn, H_pad]    f32 scratch accumulator
    """
    k = pl.program_id(1)

    @pl.when(k == 0)
    def _():
        acc_ref[...] = (jnp.dot(x_ref[...], wroot_ref[...],
                                preferred_element_type=jnp.float32)
                        + bias_ref[...])

    acc_ref[...] += jnp.dot(adj_ref[...], msg_ref[...],
                            preferred_element_type=jnp.float32)

    @pl.when(k == pl.num_programs(1) - 1)
    def _():
        acc = acc_ref[...]
        if apply_relu:
            acc = jnp.maximum(acc, 0.0)
        out_ref[...] = acc.astype(out_ref.dtype)


def _aggregate(x_bf16, w_root, bias_row, adj_wide, messages, *, apply_relu,
               tn, tk, vmem_limit):
    n_pad, h_pad = x_bf16.shape
    k_total = adj_wide.shape[1]
    grid = (n_pad // tn, k_total // tk)
    flops = 2 * n_pad * k_total * h_pad + 2 * n_pad * h_pad * h_pad
    bytes_accessed = (2 * (adj_wide.size + messages.size + x_bf16.size
                           + w_root.size)
                      + 4 * (bias_row.size + n_pad * h_pad))
    kernel = functools.partial(_aggregate_kernel, apply_relu)
    return pl.pallas_call(
        kernel,
        out_shape=jax.ShapeDtypeStruct((n_pad, h_pad), jnp.float32),
        grid_spec=pltpu.PrefetchScalarGridSpec(
            num_scalar_prefetch=0,
            grid=grid,
            in_specs=[
                pl.BlockSpec((tn, h_pad), lambda i, k: (i, 0)),      # x dst tile
                pl.BlockSpec((h_pad, h_pad), lambda i, k: (0, 0)),   # W_root
                pl.BlockSpec((1, h_pad), lambda i, k: (0, 0)),       # bias
                pl.BlockSpec((tn, tk), lambda i, k: (i, k)),         # adj slab
                pl.BlockSpec((tk, h_pad), lambda i, k: (k, 0)),      # messages
            ],
            out_specs=pl.BlockSpec((tn, h_pad), lambda i, k: (i, 0)),
            scratch_shapes=[pltpu.VMEM((tn, h_pad), jnp.float32)],
        ),
        compiler_params=pltpu.CompilerParams(
            dimension_semantics=("parallel", "arbitrary"),
            vmem_limit_bytes=vmem_limit),
        cost_estimate=pl.CostEstimate(
            flops=int(flops), transcendentals=0,
            bytes_accessed=int(bytes_accessed)),
    )(x_bf16, w_root, bias_row, adj_wide, messages)


def rgcn_gate_layer(x_f32, layer_w, adj_wide, *, apply_relu, tiles, vmem_limit):
    tm, tn, tk = tiles
    w_msg, b_gate_row, w_root, bias_row = layer_w
    n_pad, h_pad = x_f32.shape
    x_bf16 = x_f32.astype(jnp.bfloat16)
    msgs = _compute_messages(x_bf16, w_msg, b_gate_row, tm=tm,
                             vmem_limit=vmem_limit)
    msgs = msgs.reshape(NUM_RELATIONS * n_pad, h_pad)   # free leading collapse
    return _aggregate(x_bf16, w_root, bias_row, adj_wide, msgs,
                      apply_relu=apply_relu, tn=tn, tk=tk,
                      vmem_limit=vmem_limit)


# --------------------------------------------------------------------------
# Parameter init (deterministic, matches shapes implied by the module)
# --------------------------------------------------------------------------
def _init_conv_params(key, hidden):
    k1, k2, k3, k4 = jax.random.split(key, 4)
    s_h = 1.0 / jnp.sqrt(hidden)
    s_b = 1.0 / jnp.sqrt(NUM_BASES)
    return {
        "basis": jax.random.normal(k1, (NUM_BASES, hidden, hidden),
                                   jnp.float32) * s_h,
        "comp": jax.random.normal(k2, (NUM_RELATIONS, NUM_BASES),
                                  jnp.float32) * s_b,
        "root": jax.random.normal(k3, (hidden, hidden), jnp.float32) * s_h,
        "bias": jnp.zeros((hidden,), jnp.float32),
        "w_gate": jax.random.normal(k4, (NUM_RELATIONS, hidden),
                                    jnp.float32) * s_h,
        "b_gate": jnp.ones((NUM_RELATIONS,), jnp.float32),
    }


def init_params(key, hidden, relations_vocab_size):
    k_emb, k_c1, k_c2 = jax.random.split(key, 3)
    return {
        "rel_emb": jax.random.uniform(k_emb, (relations_vocab_size, hidden),
                                      jnp.float32, minval=-0.1, maxval=0.1),
        "conv1": _init_conv_params(k_c1, hidden),
        "conv2": _init_conv_params(k_c2, hidden),
    }


# --------------------------------------------------------------------------
# Glue: weight assembly, graph batching, dense wide adjacency, split
# --------------------------------------------------------------------------
def _assemble_layer_weights(conv, h, h_pad):
    """Fuse relation/gate weights (bf16) + root weight (bf16) + f32 biases."""
    # basis decomposition: W_r = sum_b comp[r, b] * basis[b]
    w_rel = jnp.einsum("rb,bij->rij", conv["comp"], conv["basis"])   # [R, H, H]
    w_rel = jnp.pad(w_rel, ((0, 0), (0, h_pad - h), (0, h_pad - h)))
    w_rel_cols = jnp.transpose(w_rel, (1, 0, 2)).reshape(
        h_pad, NUM_RELATIONS * h_pad)                                # [H_pad, R*H_pad]
    w_gate_cols = jnp.pad(conv["w_gate"].T,
                          ((0, h_pad - h), (0, GATE_PAD - NUM_RELATIONS)))
    w_msg = jnp.concatenate([w_rel_cols, w_gate_cols],
                            axis=1).astype(jnp.bfloat16)
    b_gate_row = jnp.pad(conv["b_gate"][None, :],
                         ((0, 0), (0, GATE_PAD - NUM_RELATIONS))
                         ).astype(jnp.float32)
    w_root = jnp.pad(conv["root"],
                     ((0, h_pad - h), (0, h_pad - h))).astype(jnp.bfloat16)
    bias_row = jnp.pad(conv["bias"][None, :],
                       ((0, 0), (0, h_pad - h))).astype(jnp.float32)
    return w_msg, b_gate_row, w_root, bias_row


def _build_adjacency(edge_index, edge_type, n_pad):
    """Row-normalised dense adjacency, relation-major along the contraction
    axis: adj_wide[dst, r*N_pad + src], bf16."""
    src, dst = edge_index[0], edge_index[1]
    adj = jnp.zeros((NUM_RELATIONS, n_pad, n_pad), jnp.float32)
    adj = adj.at[edge_type, dst, src].add(1.0)
    deg = jnp.sum(adj, axis=-1, keepdims=True)
    adj = adj / jnp.maximum(deg, 1.0)                 # mean agg per relation
    adj_wide = jnp.transpose(adj, (1, 0, 2)).reshape(
        n_pad, NUM_RELATIONS * n_pad)
    return adj_wide.astype(jnp.bfloat16)
    # TODO(synk): for very large graphs a sparse / scalar-prefetched adjacency
    # would avoid the O(R*N^2) dense bytes entirely.


def rgcn_gate_encoder(params, meeting_utterance_enc_hidden_states, adj_coos,
                      edge_types, rels, meeting_lens=None):
    del meeting_lens  # unused, mirrors the reference forward
    seg_len, node_feats, g_edges, g_types = [], [], [], []
    offset = 0
    for hs, adj_coo, et, rel in zip(meeting_utterance_enc_hidden_states,
                                    adj_coos, edge_types, rels):
        rel_idx = jnp.asarray(rel, jnp.int32)
        rel_embed = params["rel_emb"][rel_idx]                    # [n_rel, H]
        emb = jnp.concatenate([hs, rel_embed], axis=0)            # [n_i, H]
        assert emb.shape[0] == max(adj_coo[0]) + 1, \
            "make sure the emb == adj matrix"
        seg_len.append(emb.shape[0])
        node_feats.append(emb)
        src = jnp.asarray(adj_coo[0], jnp.int32) + offset
        dst = jnp.asarray(adj_coo[1], jnp.int32) + offset
        g_edges.append(jnp.stack([src, dst], axis=0))
        g_types.append(jnp.asarray(et, jnp.int32))
        offset += emb.shape[0]

    x = jnp.concatenate(node_feats, axis=0).astype(jnp.float32)   # [N, H]
    edge_index = jnp.concatenate(g_edges, axis=1)                 # [2, E]
    edge_type = jnp.concatenate(g_types, axis=0)                  # [E]

    n, h = x.shape
    h_pad = _round_up(max(h, LANE), LANE)
    n_pad, tiles, vmem_limit = _choose_tiling(n)

    x_pad = jnp.pad(x, ((0, n_pad - n), (0, h_pad - h)))
    adj_wide = _build_adjacency(edge_index, edge_type, n_pad)     # [N_pad, R*N_pad]

    lw1 = _assemble_layer_weights(params["conv1"], h, h_pad)
    lw2 = _assemble_layer_weights(params["conv2"], h, h_pad)

    x_pad = rgcn_gate_layer(x_pad, lw1, adj_wide, apply_relu=True,
                            tiles=tiles, vmem_limit=vmem_limit)
    x_pad = rgcn_gate_layer(x_pad, lw2, adj_wide, apply_relu=False,
                            tiles=tiles, vmem_limit=vmem_limit)

    x_out = x_pad[:n, :h]
    outs, o = [], 0
    for l in seg_len:
        outs.append(x_out[o:o + l])
        o += l
    return tuple(outs)


# --------------------------------------------------------------------------
# Example
# --------------------------------------------------------------------------
if __name__ == "__main__":
    hidden = 32
    relations_vocab_size = 10

    key = jax.random.PRNGKey(0)
    p_key, d1_key, d2_key = jax.random.split(key, 3)
    params = init_params(p_key, hidden, relations_vocab_size)

    # meeting 1: 5 utterance states + 3 relation nodes = 8 nodes
    # meeting 2: 6 utterance states + 2 relation nodes = 8 nodes
    hs1 = jax.random.normal(d1_key, (5, hidden), jnp.float32)
    hs2 = jax.random.normal(d2_key, (6, hidden), jnp.float32)
    meeting_states = [hs1, hs2]
    rels = [[1, 4, 7], [2, 5]]

    adj_coo1 = [[0, 1, 2, 3, 4, 5, 6, 7, 7, 0],
                [1, 2, 3, 4, 5, 6, 7, 0, 3, 7]]
    edge_type1 = [0, 1, 2, 3, 4, 5, 0, 1, 2, 3]

    adj_coo2 = [[0, 1, 2, 3, 4, 5, 6, 7, 2],
                [7, 7, 7, 7, 7, 7, 7, 0, 5]]
    edge_type2 = [0, 0, 1, 1, 2, 3, 4, 5, 2]

    adj_coos = [adj_coo1, adj_coo2]
    edge_types = [edge_type1, edge_type2]
    meeting_lens = [5, 6]

    outs = rgcn_gate_encoder(params, meeting_states, adj_coos, edge_types,
                             rels, meeting_lens)
    outs = jax.block_until_ready(outs)

    assert len(outs) == 2
    assert outs[0].shape == (8, hidden) and outs[1].shape == (8, hidden)
    assert all(bool(jnp.all(jnp.isfinite(o))) for o in outs)
    print("KERNEL_OK")
</pallas_src>

<mosaic_0001>
module attributes {stable_mosaic.version = 11 : i64} {
  func.func @_message_kernel(%arg0: i32, %arg1: memref<16x128xbf16, #tpu.memory_space<vmem>>, %arg2: memref<128x896xbf16, #tpu.memory_space<vmem>>, %arg3: memref<1x128xf32, #tpu.memory_space<vmem>>, %arg4: memref<6x16x128xbf16, #tpu.memory_space<vmem>>) attributes {dimension_semantics = [#tpu.dimension_semantics<parallel>], iteration_bounds = array<i64: 1>, scalar_prefetch = 0 : i64, scratch_operands = 0 : i64, tpu.core_type = #tpu.core_type<tc>, window_params = [{transform_indices = @transform_0, window_bounds = array<i64: 16, 128>}, {pipeline_mode = #tpu.pipeline_mode<synchronous>, transform_indices = @transform_1, window_bounds = array<i64: 128, 896>}, {pipeline_mode = #tpu.pipeline_mode<synchronous>, transform_indices = @transform_2, window_bounds = array<i64: 1, 128>}, {transform_indices = @transform_3, window_bounds = array<i64: 6, 16, 128>}]} {
    %c0 = arith.constant 0 : index
    %c0_0 = arith.constant 0 : index
    %0 = vector.load %arg1[%c0, %c0_0] : memref<16x128xbf16, #tpu.memory_space<vmem>>, vector<16x128xbf16>
    %c0_1 = arith.constant 0 : index
    %c0_2 = arith.constant 0 : index
    %1 = vector.load %arg2[%c0_1, %c0_2] : memref<128x896xbf16, #tpu.memory_space<vmem>>, vector<128x896xbf16>
    %cst = arith.constant dense<0.000000e+00> : vector<16x896xf32>
    %2 = tpu.matmul %0, %1, %cst {dimension_numbers = #tpu.dot_dimension_numbers<[1], [0], [0], [1], [0, 0, 1, 1], [], []>} : vector<16x128xbf16>, vector<128x896xbf16>, vector<16x896xf32> -> vector<16x896xf32>
    %3 = vector.extract_strided_slice %2 {offsets = [0, 768], sizes = [16, 128], strides = [1, 1]} : vector<16x896xf32> to vector<16x128xf32>
    %c0_3 = arith.constant 0 : index
    %c0_4 = arith.constant 0 : index
    %4 = vector.load %arg3[%c0_3, %c0_4] : memref<1x128xf32, #tpu.memory_space<vmem>>, vector<1x128xf32>
    %5 = vector.broadcast %4 : vector<1x128xf32> to vector<16x128xf32>
    %6 = arith.addf %3, %5 : vector<16x128xf32>
    %7 = arith.negf %6 : vector<16x128xf32>
    %8 = math.exp %7 : vector<16x128xf32>
    %cst_5 = arith.constant 1.000000e+00 : f32
    %9 = vector.broadcast %cst_5 : f32 to vector<16x128xf32>
    %10 = arith.addf %9, %8 : vector<16x128xf32>
    %11 = arith.divf %9, %10 : vector<16x128xf32>
    %12 = vector.extract_strided_slice %11 {offsets = [0, 0], sizes = [16, 1], strides = [1, 1]} : vector<16x128xf32> to vector<16x1xf32>
    %13 = vector.extract_strided_slice %2 {offsets = [0, 0], sizes = [16, 128], strides = [1, 1]} : vector<16x896xf32> to vector<16x128xf32>
    %14 = vector.broadcast %12 : vector<16x1xf32> to vector<16x128xf32>
    %15 = arith.mulf %14, %13 : vector<16x128xf32>
    %16 = arith.truncf %15 : vector<16x128xf32> to vector<16x128xbf16>
    %c0_6 = arith.constant 0 : index
    %c0_7 = arith.constant 0 : index
    %c0_8 = arith.constant 0 : index
    %17 = vector.load %arg4[%c0_6, %c0_7, %c0_8] : memref<6x16x128xbf16, #tpu.memory_space<vmem>>, vector<1x16x128xbf16>
    %18 = vector.shape_cast %17 : vector<1x16x128xbf16> to vector<16x128xbf16>
    %19 = vector.shape_cast %16 : vector<16x128xbf16> to vector<1x16x128xbf16>
    tpu.vector_store %arg4[%c0_6, %c0_7, %c0_8], %19 {strides = array<i32>} : memref<6x16x128xbf16, #tpu.memory_space<vmem>>, vector<1x16x128xbf16>,
    %20 = vector.extract_strided_slice %11 {offsets = [0, 1], sizes = [16, 1], strides = [1, 1]} : vector<16x128xf32> to vector<16x1xf32>
    %21 = vector.extract_strided_slice %2 {offsets = [0, 128], sizes = [16, 128], strides = [1, 1]} : vector<16x896xf32> to vector<16x128xf32>
    %22 = vector.broadcast %20 : vector<16x1xf32> to vector<16x128xf32>
    %23 = arith.mulf %22, %21 : vector<16x128xf32>
    %24 = arith.truncf %23 : vector<16x128xf32> to vector<16x128xbf16>
    %c1 = arith.constant 1 : index
    %c0_9 = arith.constant 0 : index
    %c0_10 = arith.constant 0 : index
    %25 = vector.load %arg4[%c1, %c0_9, %c0_10] : memref<6x16x128xbf16, #tpu.memory_space<vmem>>, vector<1x16x128xbf16>
    %26 = vector.shape_cast %25 : vector<1x16x128xbf16> to vector<16x128xbf16>
    %27 = vector.shape_cast %24 : vector<16x128xbf16> to vector<1x16x128xbf16>
    tpu.vector_store %arg4[%c1, %c0_9, %c0_10], %27 {strides = array<i32>} : memref<6x16x128xbf16, #tpu.memory_space<vmem>>, vector<1x16x128xbf16>,
    %28 = vector.extract_strided_slice %11 {offsets = [0, 2], sizes = [16, 1], strides = [1, 1]} : vector<16x128xf32> to vector<16x1xf32>
    %29 = vector.extract_strided_slice %2 {offsets = [0, 256], sizes = [16, 128], strides = [1, 1]} : vector<16x896xf32> to vector<16x128xf32>
    %30 = vector.broadcast %28 : vector<16x1xf32> to vector<16x128xf32>
    %31 = arith.mulf %30, %29 : vector<16x128xf32>
    %32 = arith.truncf %31 : vector<16x128xf32> to vector<16x128xbf16>
    %c2 = arith.constant 2 : index
    %c0_11 = arith.constant 0 : index
    %c0_12 = arith.constant 0 : index
    %33 = vector.load %arg4[%c2, %c0_11, %c0_12] : memref<6x16x128xbf16, #tpu.memory_space<vmem>>, vector<1x16x128xbf16>
    %34 = vector.shape_cast %33 : vector<1x16x128xbf16> to vector<16x128xbf16>
    %35 = vector.shape_cast %32 : vector<16x128xbf16> to vector<1x16x128xbf16>
    tpu.vector_store %arg4[%c2, %c0_11, %c0_12], %35 {strides = array<i32>} : memref<6x16x128xbf16, #tpu.memory_space<vmem>>, vector<1x16x128xbf16>,
    %36 = vector.extract_strided_slice %11 {offsets = [0, 3], sizes = [16, 1], strides = [1, 1]} : vector<16x128xf32> to vector<16x1xf32>
    %37 = vector.extract_strided_slice %2 {offsets = [0, 384], sizes = [16, 128], strides = [1, 1]} : vector<16x896xf32> to vector<16x128xf32>
    %38 = vector.broadcast %36 : vector<16x1xf32> to vector<16x128xf32>
    %39 = arith.mulf %38, %37 : vector<16x128xf32>
    %40 = arith.truncf %39 : vector<16x128xf32> to vector<16x128xbf16>
    %c3 = arith.constant 3 : index
    %c0_13 = arith.constant 0 : index
    %c0_14 = arith.constant 0 : index
    %41 = vector.load %arg4[%c3, %c0_13, %c0_14] : memref<6x16x128xbf16, #tpu.memory_space<vmem>>, vector<1x16x128xbf16>
    %42 = vector.shape_cast %41 : vector<1x16x128xbf16> to vector<16x128xbf16>
    %43 = vector.shape_cast %40 : vector<16x128xbf16> to vector<1x16x128xbf16>
    tpu.vector_store %arg4[%c3, %c0_13, %c0_14], %43 {strides = array<i32>} : memref<6x16x128xbf16, #tpu.memory_space<vmem>>, vector<1x16x128xbf16>,
    %44 = vector.extract_strided_slice %11 {offsets = [0, 4], sizes = [16, 1], strides = [1, 1]} : vector<16x128xf32> to vector<16x1xf32>
    %45 = vector.extract_strided_slice %2 {offsets = [0, 512], sizes = [16, 128], strides = [1, 1]} : vector<16x896xf32> to vector<16x128xf32>
    %46 = vector.broadcast %44 : vector<16x1xf32> to vector<16x128xf32>
    %47 = arith.mulf %46, %45 : vector<16x128xf32>
    %48 = arith.truncf %47 : vector<16x128xf32> to vector<16x128xbf16>
    %c4 = arith.constant 4 : index
    %c0_15 = arith.constant 0 : index
    %c0_16 = arith.constant 0 : index
    %49 = vector.load %arg4[%c4, %c0_15, %c0_16] : memref<6x16x128xbf16, #tpu.memory_space<vmem>>, vector<1x16x128xbf16>
    %50 = vector.shape_cast %49 : vector<1x16x128xbf16> to vector<16x128xbf16>
    %51 = vector.shape_cast %48 : vector<16x128xbf16> to vector<1x16x128xbf16>
    tpu.vector_store %arg4[%c4, %c0_15, %c0_16], %51 {strides = array<i32>} : memref<6x16x128xbf16, #tpu.memory_space<vmem>>, vector<1x16x128xbf16>,
    %52 = vector.extract_strided_slice %11 {offsets = [0, 5], sizes = [16, 1], strides = [1, 1]} : vector<16x128xf32> to vector<16x1xf32>
    %53 = vector.extract_strided_slice %2 {offsets = [0, 640], sizes = [16, 128], strides = [1, 1]} : vector<16x896xf32> to vector<16x128xf32>
    %54 = vector.broadcast %52 : vector<16x1xf32> to vector<16x128xf32>
    %55 = arith.mulf %54, %53 : vector<16x128xf32>
    %56 = arith.truncf %55 : vector<16x128xf32> to vector<16x128xbf16>
    %c5 = arith.constant 5 : index
    %c0_17 = arith.constant 0 : index
    %c0_18 = arith.constant 0 : index
    %57 = vector.load %arg4[%c5, %c0_17, %c0_18] : memref<6x16x128xbf16, #tpu.memory_space<vmem>>, vector<1x16x128xbf16>
    %58 = vector.shape_cast %57 : vector<1x16x128xbf16> to vector<16x128xbf16>
    %59 = vector.shape_cast %56 : vector<16x128xbf16> to vector<1x16x128xbf16>
    tpu.vector_store %arg4[%c5, %c0_17, %c0_18], %59 {strides = array<i32>} : memref<6x16x128xbf16, #tpu.memory_space<vmem>>, vector<1x16x128xbf16>,
    return
  }
  func.func @transform_0(%arg0: i32) -> (i32, i32) {
    %c0_i32 = arith.constant 0 : i32
    %c0_i32_0 = arith.constant 0 : i32
    return %arg0, %c0_i32 : i32, i32
  }
  func.func @transform_1(%arg0: i32) -> (i32, i32) {
    %c0_i32 = arith.constant 0 : i32
    %c0_i32_0 = arith.constant 0 : i32
    %c0_i32_1 = arith.constant 0 : i32
    return %c0_i32, %c0_i32_0 : i32, i32
  }
  func.func @transform_2(%arg0: i32) -> (i32, i32) {
    %c0_i32 = arith.constant 0 : i32
    %c0_i32_0 = arith.constant 0 : i32
    %c0_i32_1 = arith.constant 0 : i32
    return %c0_i32, %c0_i32_0 : i32, i32
  }
  func.func @transform_3(%arg0: i32) -> (i32, i32, i32) {
    %c0_i32 = arith.constant 0 : i32
    %c0_i32_0 = arith.constant 0 : i32
    %c0_i32_1 = arith.constant 0 : i32
    return %c0_i32, %arg0, %c0_i32_0 : i32, i32, i32
  }
}

</mosaic_0001>

<bundles_post_ra>
// kernel: tpu_custom_call.1
= control target key start
LH: loop header
LB: loop body
LE: loop exit
PB: predicated region body
PF: predicated region fallthrough
CT: control target
= control target key end

     0   :  { %8 = vsyncpa [#allocation3], 0  ;;  %s1224_s0 = inlined_call_operand.hbm [shape: bf16[16,128], index: 0, kind: input, shape index: {}]   ;;  %s1225_s1 = inlined_call_operand.hbm [shape: bf16[128,896], index: 1, kind: input, shape index: {}]   ;;  %s1226_s2 = inlined_call_operand.hbm [shape: f32[1,128], index: 2, kind: input, shape index: {}]   ;;  %s1227_s3 = inlined_call_operand.hbm [shape: bf16[6,16,128], index: 3, kind: output, shape index: {}]  }
   0x1   :  { %9 = vsyncpa [#allocation6], 0 }
   0x2   :  { %10 = vsyncpa [#allocation4], 0  ;;  %s1105_s12 = smov [#allocation5]   ;;  %s1011_s16 = scalar_lea.hbm %s1225_s1, 7168 }
   0x3   :  { %s28_s13 = sshll.u32 %s1105_s12, 4  ;;  %p1012_p0 = scmp.ne.s32.totalorder %s1225_s1, %s1011_s16  ;;  %s29_s13 = int_to_ptr.vmem [resolvable:$true] %s28_s13 }
   0x4   :  { %p1015_p1 = scmp.lt.u32.totalorder %s1011_s16, %s1225_s1 }
   0x6   :  { %p1017_p2 = pnand %p1015_p1, %p1012_p0 }
   0x8   :  { %1020 = shalt.err (!%p1017_p2)
}
   0x9   :  { %s1021_s21 = scalar_lea.vmem %s29_s13, 7168  ;;  %p1026_p4 = scmp.lt.s32.totalorder %s29_s13, %s29_s13 }
   0xa   :  { %p1022_p3 = scmp.ne.s32.totalorder %s29_s13, %s1021_s21  ;;  %p1027_p5 = scmp.lt.s32.totalorder %s1021_s21, %s1021_s21 }
   0xc   :  { %p1028_p6 = por %p1027_p5, %p1026_p4 }
   0xe   :  { %p1029_p7 = pnand %p1028_p6, %p1022_p3 }
  0x10   :  { %1032 = shalt.err (!%p1029_p7)
}
  0x11   :  { %s1106_s22 = smov 448   ;;  %s1107_s23 = smov 28  }
  0x12   :  { %34 = dma.hbm_to_vmem [thread:$0]  %s1225_s1, 7168, %s29_s13, [#allocation6], %s1106_s22, %s1106_s22, %s1107_s23  }
  0x13   :  { %s1108_s26 = smov [#allocation2]   ;;  %s1033_s30 = scalar_lea.hbm %s1224_s0, 128 }
  0x14   :  { %s16_s27 = sshll.u32 %s1108_s26, 4  ;;  %p1034_p8 = scmp.ne.s32.totalorder %s1224_s0, %s1033_s30  ;;  %s17_s27 = int_to_ptr.vmem [resolvable:$true] %s16_s27 }
  0x15   :  { %p1037_p9 = scmp.lt.u32.totalorder %s1033_s30, %s1224_s0 }
  0x17   :  { %p1039_p10 = pnand %p1037_p9, %p1034_p8 }
  0x19   :  { %1042 = shalt.err (!%p1039_p10)
}
  0x1a   :  { %s1043_s8 = scalar_lea.vmem %s17_s27, 128  ;;  %p1048_p12 = scmp.lt.s32.totalorder %s17_s27, %s17_s27 }
  0x1b   :  { %p1044_p11 = scmp.ne.s32.totalorder %s17_s27, %s1043_s8  ;;  %p1049_p13 = scmp.lt.s32.totalorder %s1043_s8, %s1043_s8 }
  0x1d   :  { %p1050_p0 = por %p1049_p13, %p1048_p12 }
  0x1f   :  { %p1051_p1 = pnand %p1050_p0, %p1044_p11 }
  0x21   :  { %1054 = shalt.err (!%p1051_p1)
}
  0x22   :  { %s1109_s1 = smov 64   ;;  %s1110_s9 = smov 4  }
  0x23   :  { %22 = dma.hbm_to_vmem [thread:$0]  %s1224_s0, 128, %s17_s27, [#allocation3], %s1109_s1, %s1109_s1, %s1110_s9  }
  0x24   :  { %s1111_s12 = smov [#allocation7]   ;;  %s1055_s16 = scalar_lea.hbm %s1226_s2, 16 }
  0x25   :  { %s41_s13 = sshll.u32 %s1111_s12, 4  ;;  %p1056_p2 = scmp.ne.s32.totalorder %s1226_s2, %s1055_s16  ;;  %s42_s13 = int_to_ptr.vmem [resolvable:$true] %s41_s13 }
  0x26   :  { %p1059_p3 = scmp.lt.u32.totalorder %s1055_s16, %s1226_s2 }
  0x28   :  { %p1061_p4 = pnand %p1059_p3, %p1056_p2 }
  0x2a   :  { %1064 = shalt.err (!%p1061_p4)
}
  0x2b   :  { %s1065_s21 = scalar_lea.vmem %s42_s13, 16  ;;  %s1069_s0 = scalar_lea.vmem %s42_s13, 32 }
  0x2c   :  { %p1066_p5 = scmp.ne.s32.totalorder %s42_s13, %s1065_s21  ;;  %p1070_p6 = scmp.lt.s32.totalorder %s42_s13, %s42_s13 }
  0x2d   :  { %p1071_p7 = scmp.lt.s32.totalorder %s1069_s0, %s1065_s21 }
  0x2f   :  { %p1072_p8 = por %p1071_p7, %p1070_p6 }
  0x31   :  { %p1073_p9 = pnand %p1072_p8, %p1066_p5 }
  0x33   :  { %1076 = shalt.err (!%p1073_p9)
}
  0x34   :  { %44 = dma.hbm_to_vmem [thread:$0]  %s1226_s2, 16, %s42_s13, [#allocation6]  }
  0x35   :  { %1099 = dma.done.wait [#allocation3], 128  }
  0x36   :  { %1100 = vsyncadd [#allocation3], 4294967168 }
  0x37   :  { %1101 = dma.done.wait [#allocation6], 7184  }
  0x38   :  { %1102 = vsyncadd [#allocation6], 4294960112  ;;  %v1112_v0 = vmov 0   ;;  %v922_v1 = vld [vmem:[#allocation5 + $0xc] ss:$28 sps:$4 sm:$0xff]   ;;  %v1183_v24 = vld [vmem:[#allocation2] sm:$0xff]  }
  0x39   :  { %490 = vmatprep.mubr.bf16.mxu1 %v1112_v0  ;;  %447 = vmatprep.mubr.bf16.mxu0 %v1112_v0  ;;  %v924_v2 = vld [vmem:[#allocation5 + $0x8] ss:$28 sps:$4 sm:$0xff]   ;;  %v927_v4 = vld [vmem:[#allocation5 + $0x40] ss:$28 sps:$4 sm:$0xff]   ;;  %v930_v6 = vld [vmem:[#allocation5 + $0x78] ss:$28 sps:$4 sm:$0xff]  }
  0x3a   :  { %910 = vset.pattern.permute.xlu0 %v1112_v0  ;;  %458 = vmatprep.subr.bf16.mxu1 %v922_v1  ;;  %v925_v3 = vld [vmem:[#allocation5 + $0x44] ss:$28 sps:$4 sm:$0xff]   ;;  %v928_v5 = vld [vmem:[#allocation5 + $0x7c] ss:$28 sps:$4 sm:$0xff]   ;;  %v931_v7 = vld [vmem:[#allocation5 + $0xb4] ss:$28 sps:$4 sm:$0xff]  }
  0x3b   :  { %459 = vmatpush1.bf16.msra.mxu1 %v924_v2  ;;  %v933_v8 = vld [vmem:[#allocation5 + $0xb0] ss:$28 sps:$4 sm:$0xff]   ;;  %v936_v10 = vld [vmem:[#allocation5 + $0xe8] ss:$28 sps:$4 sm:$0xff]   ;;  %v939_v12 = vld [vmem:[#allocation5 + $0x120] ss:$28 sps:$4 sm:$0xff]  }
  0x3c   :  { %460 = vmatprep.subr.bf16.mxu1 %v925_v3  ;;  %v934_v9 = vld [vmem:[#allocation5 + $0xec] ss:$28 sps:$4 sm:$0xff]   ;;  %v937_v11 = vld [vmem:[#allocation5 + $0x124] ss:$28 sps:$4 sm:$0xff]   ;;  %v940_v13 = vld [vmem:[#allocation5 + $0x15c] ss:$28 sps:$4 sm:$0xff]  }
  0x3d   :  { %v955_v14 = vld [vmem:[#allocation5 + $0x4] ss:$28 sps:$4 sm:$0xff]   ;;  %v958_v16 = vld [vmem:[#allocation5 + $0x3c] ss:$28 sps:$4 sm:$0xff]   ;;  %v943_v19 = vld [vmem:[#allocation5 + $0x194] ss:$28 sps:$4 sm:$0xff]  }
  0x3e   :  { %v957_v15 = vld [vmem:[#allocation5] ss:$28 sps:$4 sm:$0xff]   ;;  %415 = vmatprep.subr.bf16.mxu0 %v955_v14  ;;  %v942_v17 = vld [vmem:[#allocation5 + $0x158] ss:$28 sps:$4 sm:$0xff]   ;;  %v945_v21 = vld [vmem:[#allocation5 + $0x190] ss:$28 sps:$4 sm:$0xff]  }
  0x3f   :  { %461 = vmatpush1.bf16.msra.mxu1 %v927_v4  ;;  %416 = vmatpush1.bf16.msra.mxu0 %v957_v15  ;;  %v960_v18 = vld [vmem:[#allocation5 + $0x38] ss:$28 sps:$4 sm:$0xff]   ;;  %v963_v22 = vld [vmem:[#allocation5 + $0x70] ss:$28 sps:$4 sm:$0xff]   ;;  %v1113_v26 = vmov 0.0   ;;  %vm1114_vm0 = vmmov 0  }
  0x40   :  { %462 = vmatprep.subr.bf16.mxu1 %v928_v5  ;;  %417 = vmatprep.subr.bf16.mxu0 %v958_v16  ;;  %v961_v20 = vld [vmem:[#allocation5 + $0x74] ss:$28 sps:$4 sm:$0xff]   ;;  %v964_v23 = vld [vmem:[#allocation5 + $0xac] ss:$28 sps:$4 sm:$0xff]   ;;  %v967_v28 = vld [vmem:[#allocation5 + $0xe4] ss:$28 sps:$4 sm:$0xff]  }
  0x41   :  { %v947_v25 = vld [vmem:[#allocation5 + $0x18] ss:$28 sps:$4 sm:$0xff]   ;;  %v966_v27 = vld [vmem:[#allocation5 + $0xa8] ss:$28 sps:$4 sm:$0xff]   ;;  %v948_v29 = vld [vmem:[#allocation5 + $0x50] ss:$28 sps:$4 sm:$0xff]  }
  0x42   :  { %v969_v30 = vld [vmem:[#allocation5 + $0xe0] ss:$28 sps:$4 sm:$0xff]   ;;  %v949_v32 = vld [vmem:[#allocation5 + $0x88] ss:$28 sps:$4 sm:$0xff]   ;;  %v972_v33 = vld [vmem:[#allocation5 + $0x118] ss:$28 sps:$4 sm:$0xff]  }
  0x43   :  { %463 = vmatpush1.bf16.msra.mxu1 %v930_v6  ;;  %418 = vmatpush1.bf16.msra.mxu0 %v960_v18  ;;  %v970_v31 = vld [vmem:[#allocation5 + $0x11c] ss:$28 sps:$4 sm:$0xff]   ;;  %v973_v34 = vld [vmem:[#allocation5 + $0x154] ss:$28 sps:$4 sm:$0xff]   ;;  %v976_v37 = vld [vmem:[#allocation5 + $0x18c] ss:$28 sps:$4 sm:$0xff]  }
  0x44   :  { %464 = vmatprep.subr.bf16.mxu1 %v931_v7  ;;  %419 = vmatprep.subr.bf16.mxu0 %v961_v20  ;;  %v950_v35 = vld [vmem:[#allocation5 + $0xc0] ss:$28 sps:$4 sm:$0xff]   ;;  %v975_v36 = vld [vmem:[#allocation5 + $0x150] ss:$28 sps:$4 sm:$0xff]   ;;  %v951_v38 = vld [vmem:[#allocation5 + $0xf8] ss:$28 sps:$4 sm:$0xff]  }
  0x45   :  { %v978_v39 = vld [vmem:[#allocation5 + $0x188] ss:$28 sps:$4 sm:$0xff]   ;;  %v981_v40 = vld [vmem:[#allocation5 + $0x14] ss:$28 sps:$4 sm:$0xff]   ;;  %v954_v47 = vld [vmem:[#allocation5 + $0x1a0] ss:$28 sps:$4 sm:$0xff]  }
  0x46   :  { %v952_v41 = vld [vmem:[#allocation5 + $0x130] ss:$28 sps:$4 sm:$0xff]   ;;  %v953_v44 = vld [vmem:[#allocation5 + $0x168] ss:$28 sps:$4 sm:$0xff]   ;;  %v985_v48 = vld [vmem:[#allocation5 + $0x80] ss:$28 sps:$4 sm:$0xff]  }
  0x47   :  { %465 = vmatpush1.bf16.msra.mxu1 %v933_v8  ;;  %420 = vmatpush1.bf16.msra.mxu0 %v963_v22  ;;  %v979_v42 = vld [vmem:[#allocation5 + $0x10] ss:$28 sps:$4 sm:$0xff]   ;;  %v982_v45 = vld [vmem:[#allocation5 + $0x48] ss:$28 sps:$4 sm:$0xff]   ;;  %v990_v49 = vld [vmem:[#allocation5 + $0xbc] ss:$28 sps:$4 sm:$0xff]  }
  0x48   :  { %466 = vmatprep.subr.bf16.mxu1 %v934_v9  ;;  %421 = vmatprep.subr.bf16.mxu0 %v964_v23  ;;  %v984_v43 = vld [vmem:[#allocation5 + $0x4c] ss:$28 sps:$4 sm:$0xff]   ;;  %v987_v46 = vld [vmem:[#allocation5 + $0x84] ss:$28 sps:$4 sm:$0xff]   ;;  %v988_v50 = vld [vmem:[#allocation5 + $0xb8] ss:$28 sps:$4 sm:$0xff]  }
  0x49   :  { %v993_v51 = vld [vmem:[#allocation5 + $0xf4] ss:$28 sps:$4 sm:$0xff]   ;;  %v996_v53 = vld [vmem:[#allocation5 + $0x12c] ss:$28 sps:$4 sm:$0xff]   ;;  %v999_v55 = vld [vmem:[#allocation5 + $0x164] ss:$28 sps:$4 sm:$0xff]  }
  0x4a   :  { %v991_v52 = vld [vmem:[#allocation5 + $0xf0] ss:$28 sps:$4 sm:$0xff]   ;;  %v994_v54 = vld [vmem:[#allocation5 + $0x128] ss:$28 sps:$4 sm:$0xff]   ;;  %v997_v56 = vld [vmem:[#allocation5 + $0x160] ss:$28 sps:$4 sm:$0xff]  }
  0x4b   :  { %467 = vmatpush1.bf16.msra.mxu1 %v936_v10  ;;  %422 = vmatpush1.bf16.msra.mxu0 %v966_v27  ;;  %v1002_v57 = vld [vmem:[#allocation5 + $0x19c] ss:$28 sps:$4 sm:$0xff]   ;;  %v1115_v59 = vmov 1   ;;  %v808_v5 = vld [vmem:[#allocation7] ss:$0 sm:$0xff]  ;;  %v1117_v20 = vmov 2  }
  0x4c   :  { %468 = vmatprep.subr.bf16.mxu1 %v937_v11  ;;  %423 = vmatprep.subr.bf16.mxu0 %v967_v28  ;;  %v1000_v58 = vld [vmem:[#allocation5 + $0x198] ss:$28 sps:$4 sm:$0xff]   ;;  %v1118_v22 = vmov 4   ;;  %s1120_s2 = smov [#allocation8]  }
  0x4d   :  { %911 = vset.pattern.permute.xlu1 %v1115_v59  ;;  %s738_s24 = sshll.u32 %s1120_s2, 4  ;;  %s739_s24 = int_to_ptr.vmem [resolvable:$true] %s738_s24 }
  0x4e   :  { %s1077_s25 = scalar_lea.vmem %s739_s24, 768  ;;  %p1082_p11 = scmp.lt.s32.totalorder %s739_s24, %s739_s24 }
  0x4f   :  { %469 = vmatpush1.bf16.msra.mxu1 %v939_v12  ;;  %424 = vmatpush1.bf16.msra.mxu0 %v969_v30  ;;  %p1078_p10 = scmp.ne.s32.totalorder %s739_s24, %s1077_s25  ;;  %p1083_p12 = scmp.lt.s32.totalorder %s1077_s25, %s1077_s25 }
  0x50   :  { %470 = vmatprep.subr.bf16.mxu1 %v940_v13  ;;  %425 = vmatprep.subr.bf16.mxu0 %v970_v31 }
  0x51   :  { %p1084_p13 = por %p1083_p12, %p1082_p11 }
  0x53   :  { %471 = vmatpush1.bf16.msra.mxu1 %v942_v17  ;;  %426 = vmatpush1.bf16.msra.mxu0 %v972_v33  ;;  %p1085_p0 = pnand %p1084_p13, %p1078_p10 }
  0x54   :  { %472 = vmatprep.subr.bf16.mxu1 %v943_v19  ;;  %427 = vmatprep.subr.bf16.mxu0 %v973_v34  ;;  %v1116_v19 = vmov 3  }
  0x57   :  { %473 = vmatpush1.bf16.msra.mxu1 %v945_v21  ;;  %428 = vmatpush1.bf16.msra.mxu0 %v975_v36 }
  0x58   :  { %874 = vmatprep.subr.bf16.mxu1 %v1113_v26  ;;  %429 = vmatprep.subr.bf16.mxu0 %v976_v37 }
  0x5a   :  { %491 = vmatmul.mubr.bf16.vlgmr.msra.gmra.mrb[0].mxu1 %v1183_v24 }
  0x5b   :  { %875 = vmatpush3.bf16.msra.mxu1 %v947_v25  ;;  %890 = vmatprep.mubr.msk.bf16.mxu1 %vm1114_vm0, %v1113_v26 }
  0x5c   :  { %876 = vmatprep.subr.bf16.mxu1 %v1113_v26  ;;  %430 = vmatpush1.bf16.msra.mxu0 %v978_v39 }
  0x5d   :  { %501 = vmatprep.subr.bf16.mxu0 %v981_v40 }
  0x5f   :  { %877 = vmatpush3.bf16.msra.mxu1 %v948_v29  ;;  %448 = vmatmul.mubr.bf16.vlgmr.msra.gmra.mrb[0].mxu0 %v1183_v24 }
  0x60   :  { %878 = vmatprep.subr.bf16.mxu1 %v1113_v26  ;;  %502 = vmatpush1.bf16.msra.mxu0 %v979_v42 }
  0x61   :  { %503 = vmatprep.subr.bf16.mxu0 %v984_v43  ;;  %533 = vmatprep.mubr.bf16.mxu0 %v1112_v0 }
  0x63   :  { %879 = vmatpush3.bf16.msra.mxu1 %v949_v32 }
  0x64   :  { %880 = vmatprep.subr.bf16.mxu1 %v1113_v26  ;;  %504 = vmatpush1.bf16.msra.mxu0 %v982_v45 }
  0x65   :  { %505 = vmatprep.subr.bf16.mxu0 %v987_v46 }
  0x67   :  { %881 = vmatpush3.bf16.msra.mxu1 %v950_v35 }
  0x68   :  { %882 = vmatprep.subr.bf16.mxu1 %v1113_v26  ;;  %506 = vmatpush1.bf16.msra.mxu0 %v985_v48 }
  0x69   :  { %507 = vmatprep.subr.bf16.mxu0 %v990_v49 }
  0x6b   :  { %883 = vmatpush3.bf16.msra.mxu1 %v951_v38 }
  0x6c   :  { %884 = vmatprep.subr.bf16.mxu1 %v1113_v26  ;;  %508 = vmatpush1.bf16.msra.mxu0 %v988_v50 }
  0x6d   :  { %509 = vmatprep.subr.bf16.mxu0 %v993_v51 }
  0x6f   :  { %885 = vmatpush3.bf16.msra.mxu1 %v952_v41 }
  0x70   :  { %886 = vmatprep.subr.bf16.mxu1 %v1113_v26  ;;  %510 = vmatpush1.bf16.msra.mxu0 %v991_v52 }
  0x71   :  { %511 = vmatprep.subr.bf16.mxu0 %v996_v53 }
  0x73   :  { %887 = vmatpush3.bf16.msra.mxu1 %v953_v44 }
  0x74   :  { %888 = vmatprep.subr.bf16.mxu1 %v1113_v26  ;;  %512 = vmatpush1.bf16.msra.mxu0 %v994_v54 }
  0x75   :  { %513 = vmatprep.subr.bf16.mxu0 %v999_v55 }
  0x77   :  { %889 = vmatpush3.bf16.msra.mxu1 %v954_v47 }
  0x78   :  { %514 = vmatpush1.bf16.msra.mxu0 %v997_v56 }
  0x79   :  { %515 = vmatprep.subr.bf16.mxu0 %v1002_v57 }
  0x7a   :  { %891 = vmatmul.mubr.bf16.vlgmr.msra.gmra.mrb[4].mxu1 %v1183_v24 }
  0x7c   :  { %516 = vmatpush1.bf16.msra.mxu0 %v1000_v58 }
  0x7f   :  { %534 = vmatmul.mubr.bf16.vlgmr.msra.gmra.mrb[4].mxu0 %v1183_v24  ;;  %v1119_v24 = vmov 5  }
 0x12d   :  { %v1190_v60 = vpop.f32.mrb[0].mxu1 }
 0x12e   :  { %v1192_v61 = vpop.f32.mrb[1].mxu1 }
 0x12f   :  { %v1194_v62 = vpop.f32.mrb[2].mxu1 }
 0x130   :  { %v1196_v63 = vpop.f32.mrb[3].mxu1 }
 0x132   :  { %v449_v1 = vpop.f32.mrb[0].mxu0 }
 0x133   :  { %v1198_v2 = vpop.f32.mrb[1].mxu0 }
 0x134   :  { %v453_v3 = vpop.f32.mrb[2].mxu0 }
 0x135   :  { %v1200_v4 = vpop.f32.mrb[3].mxu0 }
 0x14d   :  { %v578_v6 = vpop.f32.mrb[4].mxu1 }
 0x14e   :  { %v592_v7 = vadd.f32 %v808_v5, %v578_v6  ;;  %v892_v8 = vpop.f32.mrb[5].mxu1 }
 0x14f   :  { %v581_v9 = vpop.f32.mrb[6].mxu1 }
 0x150   :  { %v809_v10 = vmul.f32 -1.442695, %v592_v7  ;;  %v593_v11 = vadd.f32 %v808_v5, %v581_v9  ;;  %v893_v12 = vpop.f32.mrb[7].mxu1 }
 0x152   :  { %1003 = vpow2.f32 %v809_v10  ;;  %v810_v13 = vmul.f32 -1.442695, %v593_v11  ;;  %v535_v23 = vpop.f32.mrb[4].mxu0 }
 0x153   :  { %v537_v25 = vpop.f32.mrb[5].mxu0 }
 0x154   :  { %1005 = vpow2.f32 %v810_v13  ;;  %v539_v26 = vpop.f32.mrb[6].mxu0 }
 0x155   :  { %v541_v27 = vpop.f32.mrb[7].mxu0 }
 0x15c   :  { %v1004_v14 = vpop.eup %1003 }
 0x15d   :  { %v600_v15 = vadd.f32 1.0, %v1004_v14 }
 0x15e   :  { %v1006_v16 = vpop.eup %1005 }
 0x15f   :  { %1007 = vrcp.f32 %v600_v15  ;;  %v601_v17 = vadd.f32 1.0, %v1006_v16 }
 0x161   :  { %1009 = vrcp.f32 %v601_v17 }
 0x169   :  { %v1008_v18 = vpop.eup %1007 }
 0x16a   :  { %629 = vperm.xlu1 %911, %v1008_v18   ;;  %608 = vperm.xlu0 %910, %v1008_v18  }
 0x16b   :  { %v1010_v21 = vpop.eup %1009 }
 0x16e   :  { %913 = vset.pattern.permute.xlu1 %v1116_v19  ;;  %912 = vset.pattern.permute.xlu0 %v1117_v20 }
 0x16f   :  { %671 = vperm.xlu1 %913, %v1008_v18   ;;  %650 = vperm.xlu0 %912, %v1008_v18  }
 0x173   :  { %914 = vset.pattern.permute.xlu1 %v1118_v22  ;;  %915 = vset.pattern.permute.xlu0 %v1112_v0 }
 0x174   :  { %692 = vperm.xlu1 %914, %v1008_v18   ;;  %613 = vperm.xlu0 %915, %v1010_v21  }
 0x178   :  { %916 = vset.pattern.permute.xlu1 %v1115_v59  ;;  %918 = vset.pattern.permute.xlu0 %v1116_v19 }
 0x179   :  { %633 = vperm.xlu1 %916, %v1010_v21   ;;  %675 = vperm.xlu0 %918, %v1010_v21  }
 0x17d   :  { %917 = vset.pattern.permute.xlu1 %v1117_v20  ;;  %920 = vset.pattern.permute.xlu0 %v1119_v24 }
 0x17e   :  { %654 = vperm.xlu1 %917, %v1010_v21   ;;  %713 = vperm.xlu0 %920, %v1008_v18  }
 0x182   :  { %919 = vset.pattern.permute.xlu1 %v1118_v22 }
 0x183   :  { %696 = vperm.xlu1 %919, %v1010_v21  }
 0x187   :  { %921 = vset.pattern.permute.xlu1 %v1119_v24 }
 0x188   :  { %717 = vperm.xlu1 %921, %v1010_v21  }
 0x1e9   :  { %v630_v0 = vpop.permute.xlu1 %629  ;;  %v609_v28 = vpop.permute.xlu0 %608 }
 0x1ea   :  { %v616_v33 = vmul.f32 %v609_v28, %v449_v1  ;;  %v636_v38 = vmul.f32 %v630_v0, %v1198_v2 }
 0x1ee   :  { %v672_v29 = vpop.permute.xlu1 %671  ;;  %v651_v30 = vpop.permute.xlu0 %650 }
 0x1ef   :  { %v678_v39 = vmul.f32 %v672_v29, %v1192_v61  ;;  %v657_v45 = vmul.f32 %v651_v30, %v1190_v60 }
 0x1f3   :  { %v693_v31 = vpop.permute.xlu1 %692  ;;  %v614_v32 = vpop.permute.xlu0 %613 }
 0x1f4   :  { %v617_v34 = vmul.f32 %v614_v32, %v453_v3  ;;  %v699_v49 = vmul.f32 %v693_v31, %v535_v23 }
 0x1f6   :  { %v838_v35 = vpack.c.bf16 %v617_v34, %v616_v33 }
 0x1f8   :  { %839 = vst [vmem:[#allocation8] sm:$0xff] %v838_v35   ;;  %v634_v36 = vpop.permute.xlu1 %633  ;;  %v676_v37 = vpop.permute.xlu0 %675 }
 0x1f9   :  { %v637_v40 = vmul.f32 %v634_v36, %v1200_v4  ;;  %v679_v41 = vmul.f32 %v676_v37, %v1196_v63 }
 0x1fb   :  { %v843_v42 = vpack.c.bf16 %v637_v40, %v636_v38  ;;  %v853_v43 = vpack.c.bf16 %v679_v41, %v678_v39 }
 0x1fd   :  { %844 = vst [vmem:[#allocation8 + $0x8] sm:$0xff] %v843_v42   ;;  %854 = vst [vmem:[#allocation8 + $0x18] sm:$0xff] %v853_v43   ;;  %v655_v44 = vpop.permute.xlu1 %654  ;;  %v714_v51 = vpop.permute.xlu0 %713 }
 0x1fe   :  { %v658_v46 = vmul.f32 %v655_v44, %v1194_v62  ;;  %v720_v54 = vmul.f32 %v714_v51, %v537_v25 }
 0x200   :  { %v848_v47 = vpack.c.bf16 %v658_v46, %v657_v45 }
 0x202   :  { %849 = vst [vmem:[#allocation8 + $0x10] sm:$0xff] %v848_v47   ;;  %v697_v48 = vpop.permute.xlu1 %696 }
 0x203   :  { %v700_v50 = vmul.f32 %v697_v48, %v539_v26 }
 0x205   :  { %v858_v52 = vpack.c.bf16 %v700_v50, %v699_v49 }
 0x207   :  { %859 = vst [vmem:[#allocation8 + $0x20] sm:$0xff] %v858_v52   ;;  %v718_v53 = vpop.permute.xlu1 %717 }
 0x208   :  { %v721_v55 = vmul.f32 %v718_v53, %v541_v27 }
 0x20a   :  { %v863_v56 = vpack.c.bf16 %v721_v55, %v720_v54 }
 0x20c   :  { %864 = vst [vmem:[#allocation8 + $0x28] sm:$0xff] %v863_v56  }
 0x20d   :  { %1088 = shalt.err (!%p1085_p0)
}
 0x20e   :  { %s1089_s28 = scalar_lea.hbm %s1227_s3, 768 }
 0x20f   :  { %p1090_p1 = scmp.ne.s32.totalorder %s1227_s3, %s1089_s28  ;;  %p1093_p2 = scmp.lt.u32.totalorder %s1089_s28, %s1227_s3 }
 0x211   :  { %p1095_p3 = pnand %p1093_p2, %p1090_p1 }
 0x213   :  { %1098 = shalt.err (!%p1095_p3)
}
 0x214   :  { %744 = dma.vmem_to_hbm [thread:$0]  %s739_s24, 768, %s1227_s3, [#allocation4], %s1109_s1, %s1109_s1, %s1110_s9  }
 0x215   :  { %1103 = dma.done.wait [#allocation4], 768  }
 0x216   :  { %1104 = vsyncadd [#allocation4], 4294966528 }
 0x217   :  { %748 = vsyncpa [#allocation3], 1 }
 0x218   :  { %749 = vsyncpa [#allocation6], 1 }
 0x219   :  { %750 = vsyncpa [#allocation4], 1 }

</bundles_post_ra>
